<compile_context>
chip_gen: v6e
topology: v6e:2x2x1
jax: 0.10.0
libtpu: 0.0.40
codegen_flags: <defaults>
</compile_context>

<pallas_src>
import functools

import jax
import jax.numpy as jnp
from jax.experimental import pallas as pl
from jax.experimental.pallas import tpu as pltpu


def _round_up(x, m):
    return ((x + m - 1) // m) * m


def _pad2(a, rows, cols):
    """Zero-pad a 2-D array up to (rows, cols)."""
    return jnp.pad(a, ((0, rows - a.shape[0]), (0, cols - a.shape[1])))


def _gcn_fused_kernel(s_ref, x_ref, w1t_ref, b1_ref, w2t_ref, b2_ref, o_ref):
    """Fused 2-layer GCN forward. All refs are full-array VMEM blocks.

    s_ref   : (n_p, n_p)     f32   (adjacency / similarity, zero row/col padded)
    x_ref   : (n_p, in_p)    f32   (features, zero padded)
    w1t_ref : (in_p, hid_p)  bf16  (W1^T, zero padded, packed at init)
    b1_ref  : (1, hid_p)     f32
    w2t_ref : (hid_p, out_p) bf16  (W2^T, zero padded, packed at init)
    b2_ref  : (1, out_p)     f32
    o_ref   : (n_p, out_p)   f32
    """
    s = s_ref[...]                                                       # f32

    # ---- layer 1: relu((S @ X) @ W1^T + b1) ----
    sx = jnp.dot(s, x_ref[...], preferred_element_type=jnp.float32)     # (n_p, in_p)
    z1 = jnp.dot(sx.astype(jnp.bfloat16), w1t_ref[...],
                 preferred_element_type=jnp.float32) + b1_ref[...]      # (n_p, hid_p)
    h = jnp.maximum(z1, 0.0)      # padded hid cols stay 0 (bias pad is 0, relu(0)=0)

    # ---- layer 2: relu((S @ h) @ W2^T + b2) ----
    sh = jnp.dot(s, h, preferred_element_type=jnp.float32)              # (n_p, hid_p)
    z2 = jnp.dot(sh.astype(jnp.bfloat16), w2t_ref[...],
                 preferred_element_type=jnp.float32) + b2_ref[...]      # (n_p, out_p)
    o_ref[...] = jnp.maximum(z2, 0.0)


def pack_gcn_params(params):
    """One-time packing of the GCN weights for the kernel.

    Transposes W1/W2 (kernel consumes W^T as lane-major RHS), zero-pads feature
    dims to multiples of 128, casts weights to bf16 (MXU fast path) and biases
    to f32.  Call this once at init; do NOT call it per forward.
    """
    w1, b1, w2, b2 = params
    hidden, in_feats = w1.shape
    num_output = w2.shape[0]
    in_p = _round_up(in_feats, 128)
    hid_p = _round_up(hidden, 128)
    out_p = _round_up(num_output, 128)

    w1t = _pad2(w1.T.astype(jnp.float32), in_p, hid_p).astype(jnp.bfloat16)
    w2t = _pad2(w2.T.astype(jnp.float32), hid_p, out_p).astype(jnp.bfloat16)
    b1p = _pad2(b1.astype(jnp.float32).reshape(1, -1), 1, hid_p)
    b2p = _pad2(b2.astype(jnp.float32).reshape(1, -1), 1, out_p)
    return (w1t, b1p, w2t, b2p), num_output


def gcn_forward(similar, inputs, packed, *, num_output):
    """GCN.forward: two stacked GCNLayers fused into one Pallas kernel call.

    `packed` must come from pack_gcn_params (already transposed/padded/bf16).
    """
    w1t, b1p, w2t, b2p = packed
    n = inputs.shape[0]
    in_p, hid_p = w1t.shape
    out_p = w2t.shape[1]
    n_p = _round_up(n, 8)  # f32 sublane multiple

    # Only per-call layout plumbing left: zero-pad S / X (no dtype conversion,
    # and a no-op when shapes are already aligned).
    s_p = _pad2(similar.astype(jnp.float32), n_p, n_p)
    x_p = _pad2(inputs.astype(jnp.float32), n_p, in_p)

    flops = 2 * (n_p * n_p * in_p + n_p * in_p * hid_p
                 + n_p * n_p * hid_p + n_p * hid_p * out_p)
    bytes_accessed = (s_p.size * 4 + x_p.size * 4 + w1t.size * 2 + b1p.size * 4
                      + w2t.size * 2 + b2p.size * 4 + n_p * out_p * 4)

    vmem_spec = pl.BlockSpec(memory_space=pltpu.MemorySpace.VMEM)
    out_padded = pl.pallas_call(
        _gcn_fused_kernel,
        out_shape=jax.ShapeDtypeStruct((n_p, out_p), jnp.float32),
        in_specs=[vmem_spec] * 6,
        out_specs=vmem_spec,
        compiler_params=pltpu.CompilerParams(vmem_limit_bytes=32 << 20),
        cost_estimate=pl.CostEstimate(flops=flops, transcendentals=0,
                                      bytes_accessed=bytes_accessed),
    )(s_p, x_p, w1t, b1p, w2t, b2p)

    # Strip node/lane padding outside the kernel (trivial at these sizes; keep
    # the padded slab flowing downstream instead if the consumer tolerates it).
    return out_padded[:n, :num_output]


def init_gcn_params(key, in_feats, hidden_size, num_output):
    """Deterministic init mimicking nn.Linear defaults (uniform in +-1/sqrt(fan_in))."""
    k1, k2, k3, k4 = jax.random.split(key, 4)
    lim1 = 1.0 / jnp.sqrt(in_feats)
    lim2 = 1.0 / jnp.sqrt(hidden_size)
    w1 = jax.random.uniform(k1, (hidden_size, in_feats), jnp.float32, -lim1, lim1)
    b1 = jax.random.uniform(k2, (hidden_size,), jnp.float32, -lim1, lim1)
    w2 = jax.random.uniform(k3, (num_output, hidden_size), jnp.float32, -lim2, lim2)
    b2 = jax.random.uniform(k4, (num_output,), jnp.float32, -lim2, lim2)
    return (w1, b1, w2, b2)


if __name__ == "__main__":
    # Small shapes consistent with the module's forward:
    #   N nodes, in_feats input features, hidden_size, num_output
    N, in_feats, hidden_size, num_output = 8, 32, 32, 16

    key = jax.random.PRNGKey(0)
    k_sim, k_x, k_params = jax.random.split(key, 3)

    similar = jax.random.uniform(k_sim, (N, N), jnp.float32)
    inputs = jax.random.normal(k_x, (N, in_feats), jnp.float32)
    params = init_gcn_params(k_params, in_feats, hidden_size, num_output)

    # One-time param packing (transpose / pad / bf16) — hoisted out of forward.
    packed, n_out = pack_gcn_params(params)

    fwd = jax.jit(functools.partial(gcn_forward, num_output=n_out))
    out = fwd(similar, inputs, packed)
    jax.block_until_ready(out)

    # Reference in plain f32 JAX (same math as the PyTorch module).
    w1, b1, w2, b2 = params
    h_ref = jnp.maximum((similar @ inputs) @ w1.T + b1, 0.0)
    ref = jnp.maximum((similar @ h_ref) @ w2.T + b2, 0.0)

    assert out.shape == (N, num_output)
    # S-contractions are f32; only the weight matmuls use bf16 operands.
    assert jnp.allclose(out, ref, atol=2e-2, rtol=2e-2), (
        float(jnp.max(jnp.abs(out - ref))))

    print("KERNEL_OK")
</pallas_src>

<mosaic_0001>
module attributes {stable_mosaic.version = 11 : i64} {
  func.func @_gcn_fused_kernel(%arg0: memref<8x8xf32, #tpu.memory_space<vmem>>, %arg1: memref<8x128xf32, #tpu.memory_space<vmem>>, %arg2: memref<128x128xbf16, #tpu.memory_space<vmem>>, %arg3: memref<1x128xf32, #tpu.memory_space<vmem>>, %arg4: memref<128x128xbf16, #tpu.memory_space<vmem>>, %arg5: memref<1x128xf32, #tpu.memory_space<vmem>>, %arg6: memref<8x128xf32, #tpu.memory_space<vmem>>) attributes {dimension_semantics = [], scalar_prefetch = 0 : i64, scratch_operands = 0 : i64, tpu.core_type = #tpu.core_type<tc>} {
    %c0 = arith.constant 0 : index
    %c0_0 = arith.constant 0 : index
    %0 = vector.load %arg0[%c0, %c0_0] : memref<8x8xf32, #tpu.memory_space<vmem>>, vector<8x8xf32>
    %c0_1 = arith.constant 0 : index
    %c0_2 = arith.constant 0 : index
    %1 = vector.load %arg1[%c0_1, %c0_2] : memref<8x128xf32, #tpu.memory_space<vmem>>, vector<8x128xf32>
    %cst = arith.constant dense<0.000000e+00> : vector<8x128xf32>
    %2 = tpu.matmul %0, %1, %cst {dimension_numbers = #tpu.dot_dimension_numbers<[1], [0], [0], [1], [0, 0, 1, 1], [], []>} : vector<8x8xf32>, vector<8x128xf32>, vector<8x128xf32> -> vector<8x128xf32>
    %3 = arith.truncf %2 : vector<8x128xf32> to vector<8x128xbf16>
    %c0_3 = arith.constant 0 : index
    %c0_4 = arith.constant 0 : index
    %4 = vector.load %arg2[%c0_3, %c0_4] : memref<128x128xbf16, #tpu.memory_space<vmem>>, vector<128x128xbf16>
    %cst_5 = arith.constant dense<0.000000e+00> : vector<8x128xf32>
    %5 = tpu.matmul %3, %4, %cst_5 {dimension_numbers = #tpu.dot_dimension_numbers<[1], [0], [0], [1], [0, 0, 1, 1], [], []>} : vector<8x128xbf16>, vector<128x128xbf16>, vector<8x128xf32> -> vector<8x128xf32>
    %c0_6 = arith.constant 0 : index
    %c0_7 = arith.constant 0 : index
    %6 = vector.load %arg3[%c0_6, %c0_7] : memref<1x128xf32, #tpu.memory_space<vmem>>, vector<1x128xf32>
    %7 = vector.broadcast %6 : vector<1x128xf32> to vector<8x128xf32>
    %8 = arith.addf %5, %7 : vector<8x128xf32>
    %cst_8 = arith.constant 0.000000e+00 : f32
    %9 = vector.broadcast %cst_8 : f32 to vector<8x128xf32>
    %10 = arith.maximumf %8, %9 : vector<8x128xf32>
    %cst_9 = arith.constant dense<0.000000e+00> : vector<8x128xf32>
    %11 = tpu.matmul %0, %10, %cst_9 {dimension_numbers = #tpu.dot_dimension_numbers<[1], [0], [0], [1], [0, 0, 1, 1], [], []>} : vector<8x8xf32>, vector<8x128xf32>, vector<8x128xf32> -> vector<8x128xf32>
    %12 = arith.truncf %11 : vector<8x128xf32> to vector<8x128xbf16>
    %c0_10 = arith.constant 0 : index
    %c0_11 = arith.constant 0 : index
    %13 = vector.load %arg4[%c0_10, %c0_11] : memref<128x128xbf16, #tpu.memory_space<vmem>>, vector<128x128xbf16>
    %cst_12 = arith.constant dense<0.000000e+00> : vector<8x128xf32>
    %14 = tpu.matmul %12, %13, %cst_12 {dimension_numbers = #tpu.dot_dimension_numbers<[1], [0], [0], [1], [0, 0, 1, 1], [], []>} : vector<8x128xbf16>, vector<128x128xbf16>, vector<8x128xf32> -> vector<8x128xf32>
    %c0_13 = arith.constant 0 : index
    %c0_14 = arith.constant 0 : index
    %15 = vector.load %arg5[%c0_13, %c0_14] : memref<1x128xf32, #tpu.memory_space<vmem>>, vector<1x128xf32>
    %16 = vector.broadcast %15 : vector<1x128xf32> to vector<8x128xf32>
    %17 = arith.addf %14, %16 : vector<8x128xf32>
    %cst_15 = arith.constant 0.000000e+00 : f32
    %18 = vector.broadcast %cst_15 : f32 to vector<8x128xf32>
    %19 = arith.maximumf %17, %18 : vector<8x128xf32>
    %c0_16 = arith.constant 0 : index
    %c0_17 = arith.constant 0 : index
    %20 = vector.load %arg6[%c0_16, %c0_17] : memref<8x128xf32, #tpu.memory_space<vmem>>, vector<8x128xf32>
    tpu.vector_store %arg6[%c0_16, %c0_17], %19 {strides = array<i32>} : memref<8x128xf32, #tpu.memory_space<vmem>>, vector<8x128xf32>,
    return
  }
}

</mosaic_0001>

<bundles_post_ra>
// kernel: gcn_forward.1
= control target key start
LH: loop header
LB: loop body
LE: loop exit
PB: predicated region body
PF: predicated region fallthrough
CT: control target
= control target key end

     0   :  { %11 = vsyncpa [#allocation3], 0  ;;  %s714_s0 = inlined_call_operand.vmem [shape: f32[8,8], index: 0, kind: input, shape index: {}]   ;;  %s715_s1 = inlined_call_operand.vmem [shape: f32[8,128], index: 1, kind: input, shape index: {}]   ;;  %s716_s2 = inlined_call_operand.hbm [shape: bf16[128,128], index: 2, kind: input, shape index: {}]   ;;  %s717_s3 = inlined_call_operand.vmem [shape: f32[1,128], index: 3, kind: input, shape index: {}]   ;;  %s718_s4 = inlined_call_operand.hbm [shape: bf16[128,128], index: 4, kind: input, shape index: {}]   ;;  %s719_s5 = inlined_call_operand.vmem [shape: f32[1,128], index: 5, kind: input, shape index: {}]   ;;  %s720_s6 = inlined_call_operand.hbm [shape: f32[8,128], index: 6, kind: output, shape index: {}]  }
   0x1   :  { %12 = vsyncpa [#allocation6], 0 }
   0x2   :  { %13 = vsyncpa [#allocation4], 0  ;;  %s623_s21 = smov [#allocation2]  }
   0x3   :  { %s23_s22 = sshll.u32 %s623_s21, 4  ;;  %s24_s22 = int_to_ptr.vmem [resolvable:$true] %s23_s22 }
   0x4   :  { %s565_s23 = scalar_lea.vmem %s24_s22, 1024  ;;  %p570_p1 = scmp.lt.s32.totalorder %s24_s22, %s24_s22 }
   0x5   :  { %p566_p0 = scmp.ne.s32.totalorder %s24_s22, %s565_s23  ;;  %p571_p2 = scmp.lt.s32.totalorder %s565_s23, %s565_s23 }
   0x7   :  { %p572_p3 = por %p571_p2, %p570_p1 }
   0x9   :  { %p573_p4 = pnand %p572_p3, %p566_p0 }
   0xb   :  { %576 = shalt.err (!%p573_p4)
}
   0xc   :  { %s624_s24 = smov 64   ;;  %s625_s25 = smov 4  }
   0xd   :  { %29 = dma.hbm_to_vmem [thread:$0]  %s716_s2, 1024, %s24_s22, [#allocation3], %s624_s24, %s624_s24, %s625_s25  }
   0xe   :  { %s626_s28 = smov [#allocation5]  }
   0xf   :  { %s37_s29 = sshll.u32 %s626_s28, 4  ;;  %s38_s29 = int_to_ptr.vmem [resolvable:$true] %s37_s29 }
  0x10   :  { %s585_s30 = scalar_lea.vmem %s38_s29, 1024  ;;  %p590_p6 = scmp.lt.s32.totalorder %s38_s29, %s38_s29 }
  0x11   :  { %p586_p5 = scmp.ne.s32.totalorder %s38_s29, %s585_s30  ;;  %p591_p7 = scmp.lt.s32.totalorder %s585_s30, %s585_s30 }
  0x13   :  { %p592_p8 = por %p591_p7, %p590_p6 }
  0x15   :  { %p593_p9 = pnand %p592_p8, %p586_p5 }
  0x17   :  { %596 = shalt.err (!%p593_p9)
}
  0x18   :  { %43 = dma.hbm_to_vmem [thread:$0]  %s718_s4, 1024, %s38_s29, [#allocation6], %s624_s24, %s624_s24, %s625_s25  }
  0x19   :  { %617 = dma.done.wait [#allocation3], 1024  }
  0x1a   :  { %618 = vsyncadd [#allocation3], 4294966272 }
  0x1b   :  { %619 = dma.done.wait [#allocation6], 1024  }
  0x1c   :  { %620 = vsyncadd [#allocation6], 4294966272  ;;  %v627_v0 = vmov 0.0   ;;  %vm628_vm0 = vmmov 0   ;;  %vm55_vm1 = vcmask 64512   ;;  %v54_v1 = vld [vmem:[%s715_s1] sm:$0xff] }
  0x1d   :  { %484 = vmatprep.subr.mxu1 %v627_v0  ;;  %486 = vmatprep.mubr.msk.f32.mxu1 %vm628_vm0, %v627_v0  ;;  %v53_v2 = vld [vmem:[%s714_s0] sm:$0xff]  ;;  %v541_v3 = vld [vmem:[#allocation2 + $0x38] sm:$0xff]   ;;  %v542_v4 = vld [vmem:[#allocation2 + $0x30] sm:$0xff]   ;;  %s629_s12 = smov [#allocation7]  }
  0x1e   :  { %509 = vmatprep.subr.mxu0 %v627_v0  ;;  %511 = vmatprep.mubr.msk.f32.mxu0 %vm628_vm0, %v627_v0  ;;  %v543_v5 = vld [vmem:[#allocation2 + $0x28] sm:$0xff]   ;;  %v544_v6 = vld [vmem:[#allocation2 + $0x20] sm:$0xff]   ;;  %v545_v7 = vld [vmem:[#allocation2 + $0x18] sm:$0xff]   ;;  %s432_s13 = sshll.u32 %s629_s12, 4  ;;  %s433_s13 = int_to_ptr.vmem [resolvable:$true] %s432_s13 }
  0x1f   :  { %485 = vmatpush3.msra.mxu1 %v54_v1  ;;  %v546_v8 = vld [vmem:[#allocation2 + $0x10] sm:$0xff]   ;;  %v547_v9 = vld [vmem:[#allocation2 + $0x8] sm:$0xff]   ;;  %v548_v10 = vld [vmem:[#allocation2] sm:$0xff]   ;;  %s597_s14 = scalar_lea.vmem %s433_s13, 128  ;;  %p602_p11 = scmp.lt.s32.totalorder %s433_s13, %s433_s13 }
  0x20   :  { %487 = vmatmul.mubr.msk.f32.vlgmr.msra.gmra.mxu1 %vm55_vm1, %v53_v2  ;;  %489 = vmatprep.subr.bf16.mxu1 %v627_v0  ;;  %v443_v14 = vld [vmem:[%s717_s3] ss:$0 sm:$0xff]  ;;  %v549_v19 = vld [vmem:[#allocation5 + $0x38] sm:$0xff]   ;;  %v550_v22 = vld [vmem:[#allocation5 + $0x30] sm:$0xff]   ;;  %p598_p10 = scmp.ne.s32.totalorder %s433_s13, %s597_s14  ;;  %p603_p12 = scmp.lt.s32.totalorder %s597_s14, %s597_s14 }
  0x21   :  { %490 = vmatpush3.bf16.msra.mxu1 %v541_v3  ;;  %505 = vmatprep.mubr.msk.bf16.mxu1 %vm628_vm0, %v627_v0  ;;  %v551_v23 = vld [vmem:[#allocation5 + $0x28] sm:$0xff]   ;;  %v552_v24 = vld [vmem:[#allocation5 + $0x20] sm:$0xff]   ;;  %v553_v25 = vld [vmem:[#allocation5 + $0x18] sm:$0xff]  }
  0x22   :  { %491 = vmatprep.subr.bf16.mxu1 %v627_v0  ;;  %v554_v26 = vld [vmem:[#allocation5 + $0x10] sm:$0xff]   ;;  %v555_v27 = vld [vmem:[#allocation5 + $0x8] sm:$0xff]   ;;  %v556_v28 = vld [vmem:[#allocation5] sm:$0xff]   ;;  %p604_p13 = por %p603_p12, %p602_p11 }
  0x23   :  { %v453_v32 = vld [vmem:[%s719_s5] ss:$0 sm:$0xff] }
  0x24   :  { %p605_p0 = pnand %p604_p13, %p598_p10 }
  0x25   :  { %492 = vmatpush3.bf16.msra.mxu1 %v542_v4 }
  0x26   :  { %493 = vmatprep.subr.bf16.mxu1 %v627_v0 }
  0x29   :  { %494 = vmatpush3.bf16.msra.mxu1 %v543_v5 }
  0x2a   :  { %495 = vmatprep.subr.bf16.mxu1 %v627_v0 }
  0x2d   :  { %496 = vmatpush3.bf16.msra.mxu1 %v544_v6 }
  0x2e   :  { %497 = vmatprep.subr.bf16.mxu1 %v627_v0 }
  0x31   :  { %498 = vmatpush3.bf16.msra.mxu1 %v545_v7 }
  0x32   :  { %499 = vmatprep.subr.bf16.mxu1 %v627_v0 }
  0x35   :  { %500 = vmatpush3.bf16.msra.mxu1 %v546_v8 }
  0x36   :  { %501 = vmatprep.subr.bf16.mxu1 %v627_v0 }
  0x39   :  { %502 = vmatpush3.bf16.msra.mxu1 %v547_v9 }
  0x3a   :  { %503 = vmatprep.subr.bf16.mxu1 %v627_v0 }
  0x3d   :  { %504 = vmatpush3.bf16.msra.mxu1 %v548_v10 }
  0xe0   :  { %v125_v11 = vpop.f32.mrf.mxu1 }
  0xe1   :  { %v129_v12 = vpack.c.bf16 %v125_v11, %v125_v11 }
  0xe2   :  { %v488_v13 = vpop.f32.mrf.mxu1 }
  0xe3   :  { %506 = vmatmul.mubr.bf16.vlgmr.msra.gmra.mxu1 %v129_v12 }
 0x1a3   :  { %v235_v15 = vpop.f32.mrf.mxu1 }
 0x1a4   :  { %v236_v16 = vadd.f32 %v443_v14, %v235_v15 }
 0x1a5   :  { %v507_v17 = vpop.f32.mrf.mxu1 }
 0x1a6   :  { %v241_v18 = vmax.f32 %v236_v16, 0.0 }
 0x1a7   :  { %v238_v20 = vpop.f32.mrf.mxu1 }
 0x1a8   :  { %510 = vmatpush3.msra.mxu0 %v241_v18 }
 0x1a9   :  { %v508_v21 = vpop.f32.mrf.mxu1  ;;  %512 = vmatmul.mubr.msk.f32.vlgmr.msra.gmra.mxu0 %vm55_vm1, %v53_v2  ;;  %514 = vmatprep.subr.bf16.mxu0 %v627_v0 }
 0x1aa   :  { %515 = vmatpush3.bf16.msra.mxu0 %v549_v19  ;;  %530 = vmatprep.mubr.msk.bf16.mxu0 %vm628_vm0, %v627_v0 }
 0x1ab   :  { %516 = vmatprep.subr.bf16.mxu0 %v627_v0 }
 0x1ae   :  { %517 = vmatpush3.bf16.msra.mxu0 %v550_v22 }
 0x1af   :  { %518 = vmatprep.subr.bf16.mxu0 %v627_v0 }
 0x1b2   :  { %519 = vmatpush3.bf16.msra.mxu0 %v551_v23 }
 0x1b3   :  { %520 = vmatprep.subr.bf16.mxu0 %v627_v0 }
 0x1b6   :  { %521 = vmatpush3.bf16.msra.mxu0 %v552_v24 }
 0x1b7   :  { %522 = vmatprep.subr.bf16.mxu0 %v627_v0 }
 0x1ba   :  { %523 = vmatpush3.bf16.msra.mxu0 %v553_v25 }
 0x1bb   :  { %524 = vmatprep.subr.bf16.mxu0 %v627_v0 }
 0x1be   :  { %525 = vmatpush3.bf16.msra.mxu0 %v554_v26 }
 0x1bf   :  { %526 = vmatprep.subr.bf16.mxu0 %v627_v0 }
 0x1c2   :  { %527 = vmatpush3.bf16.msra.mxu0 %v555_v27 }
 0x1c3   :  { %528 = vmatprep.subr.bf16.mxu0 %v627_v0 }
 0x1c6   :  { %529 = vmatpush3.bf16.msra.mxu0 %v556_v28 }
 0x269   :  { %v308_v29 = vpop.f32.mrf.mxu0 }
 0x26a   :  { %v312_v30 = vpack.c.bf16 %v308_v29, %v308_v29 }
 0x26b   :  { %v513_v31 = vpop.f32.mrf.mxu0 }
 0x26c   :  { %531 = vmatmul.mubr.bf16.vlgmr.msra.gmra.mxu0 %v312_v30 }
 0x32c   :  { %v418_v33 = vpop.f32.mrf.mxu0 }
 0x32d   :  { %v419_v34 = vadd.f32 %v453_v32, %v418_v33 }
 0x32e   :  { %v532_v35 = vpop.f32.mrf.mxu0 }
 0x32f   :  { %v424_v36 = vmax.f32 %v419_v34, 0.0 }
 0x330   :  { %v421_v37 = vpop.f32.mrf.mxu0 }
 0x331   :  { %425 = vst [vmem:[#allocation7] sm:$0xff] %v424_v36 }
 0x332   :  { %v533_v38 = vpop.f32.mrf.mxu0 }
 0x333   :  { %608 = shalt.err (!%p605_p0)
}
 0x334   :  { %435 = dma.vmem_to_hbm [thread:$0]  %s433_s13, 128, %s720_s6, [#allocation4]  }
 0x335   :  { %621 = dma.done.wait [#allocation4], 128  }
 0x336   :  { %622 = vsyncadd [#allocation4], 4294967168 }
 0x337   :  { %439 = vsyncpa [#allocation3], 1 }
 0x338   :  { %440 = vsyncpa [#allocation6], 1 }
 0x339   :  { %441 = vsyncpa [#allocation4], 1 }

</bundles_post_ra>
